<compile_context>
chip_gen: v6e
topology: v6e:2x2x1
jax: 0.10.0
libtpu: 0.0.40
codegen_flags: <defaults>
</compile_context>

<pallas_src>
import functools

import jax
import jax.numpy as jnp
from jax.experimental import pallas as pl
from jax.experimental.pallas import tpu as pltpu


def _round_up(x: int, m: int) -> int:
    return ((x + m - 1) // m) * m


def encoder_kernel(x_ref, w1_ref, b1_ref, wh_ref, bh_ref, out_ref, *, o_pad):
    # Hidden layer: Linear + ReLU.  MXU matmul with f32 accumulation; bias add
    # and ReLU stay in f32 on the VPU (safe on v5e where VPU/EUP lack bf16).
    h = jnp.dot(x_ref[...], w1_ref[...], preferred_element_type=jnp.float32)
    h = jnp.maximum(h + b1_ref[...], 0.0)

    # Fused heads: one lane-dense matmul producing [mean | var] logits.
    h = h.astype(wh_ref.dtype)
    y = jnp.dot(h, wh_ref[...], preferred_element_type=jnp.float32) + bh_ref[...]

    # exp() only on the variance half (lanes >= o_pad); mean half passes through.
    col = jax.lax.broadcasted_iota(jnp.int32, y.shape, 1)
    out_ref[...] = jnp.where(col >= o_pad, jnp.exp(y), y).astype(out_ref.dtype)


def encoder_forward(x, params, *, tile_b=None, compute_dtype=jnp.float32):
    """x: (B, input_dim) float32.  params: pre-transposed (in, out) weights,
    (1, out) biases.  Returns (q_m, q_v), both (B, output_dim) float32."""
    B, D_in = x.shape
    H = params["w1"].shape[1]
    O = params["wm"].shape[1]

    # --- padded / fused geometry -------------------------------------------
    D_in_p = _round_up(D_in, 128)          # contraction dim of layer 1
    H_p = _round_up(H, 128)                # hidden width
    O_p = _round_up(O, 128)                # per-head lane-aligned width
    N_heads = 2 * O_p                      # fused [mean | var] output width

    if tile_b is None:
        tile_b = min(256, _round_up(B, 8)) # pipeline-friendly batch tile
    tile_b = _round_up(tile_b, 8)
    num_tiles = pl.cdiv(B, tile_b)
    B_pad = num_tiles * tile_b

    # --- pad / fuse operands (zero padding is mathematically inert) --------
    f32 = jnp.float32
    x_p = jnp.pad(x, ((0, B_pad - B), (0, D_in_p - D_in))).astype(compute_dtype)

    w1_p = jnp.pad(params["w1"], ((0, D_in_p - D_in), (0, H_p - H))).astype(compute_dtype)
    b1_p = jnp.pad(params["b1"], ((0, 0), (0, H_p - H))).astype(f32)

    wm_p = jnp.pad(params["wm"], ((0, H_p - H), (0, O_p - O)))
    wv_p = jnp.pad(params["wv"], ((0, H_p - H), (0, O_p - O)))
    wh = jnp.concatenate([wm_p, wv_p], axis=1).astype(compute_dtype)   # (H_p, 2*O_p)

    bm_p = jnp.pad(params["bm"], ((0, 0), (0, O_p - O)))
    bv_p = jnp.pad(params["bv"], ((0, 0), (0, O_p - O)))
    bh = jnp.concatenate([bm_p, bv_p], axis=1).astype(f32)             # (1, 2*O_p)

    # --- VMEM budget (double-buffered inputs/outputs), capped for v7x ------
    isz = jnp.dtype(compute_dtype).itemsize
    footprint = 2 * (tile_b * D_in_p * isz       # x tile
                     + D_in_p * H_p * isz        # w1
                     + H_p * 4                   # b1
                     + H_p * N_heads * isz       # fused head weight
                     + N_heads * 4               # fused head bias
                     + tile_b * N_heads * 4)     # fused output tile
    vmem_limit = int(min(64 * 2**20, max(16 * 2**20, 1.5 * footprint)))

    full = lambda shape: pl.BlockSpec(shape, lambda i: (0, 0))
    batched = lambda shape: pl.BlockSpec(shape, lambda i: (i, 0))

    out = pl.pallas_call(
        functools.partial(encoder_kernel, o_pad=O_p),
        out_shape=jax.ShapeDtypeStruct((B_pad, N_heads), jnp.float32),
        grid_spec=pltpu.PrefetchScalarGridSpec(
            num_scalar_prefetch=0,
            grid=(num_tiles,),
            in_specs=[
                batched((tile_b, D_in_p)),   # x
                full((D_in_p, H_p)),         # w1
                full((1, H_p)),              # b1
                full((H_p, N_heads)),        # fused head weight
                full((1, N_heads)),          # fused head bias
            ],
            out_specs=batched((tile_b, N_heads)),
        ),
        compiler_params=pltpu.CompilerParams(
            dimension_semantics=("parallel",),
            vmem_limit_bytes=vmem_limit),
    )(x_p, w1_p, b1_p, wh, bh)

    q_m = out[:B, :O]
    q_v = out[:B, O_p:O_p + O]
    return q_m, q_v


def init_params(key, input_dim, hidden_dim, output_dim):
    """Deterministic init mimicking nn.Linear default (uniform +/- 1/sqrt(fan_in)).
    Weights stored as (in, out), i.e. transposed vs. PyTorch's (out, in)."""
    ks = jax.random.split(key, 6)

    def linear(kw, kb, fan_in, fan_out):
        bound = 1.0 / jnp.sqrt(fan_in)
        w = jax.random.uniform(kw, (fan_in, fan_out), jnp.float32, -bound, bound)
        b = jax.random.uniform(kb, (1, fan_out), jnp.float32, -bound, bound)
        return w, b

    w1, b1 = linear(ks[0], ks[1], input_dim, hidden_dim)
    wm, bm = linear(ks[2], ks[3], hidden_dim, output_dim)
    wv, bv = linear(ks[4], ks[5], hidden_dim, output_dim)
    return {"w1": w1, "b1": b1, "wm": wm, "bm": bm, "wv": wv, "bv": bv}


def encoder_ref(x, p):
    """Pure-JAX reference for correctness check."""
    h = jnp.maximum(x @ p["w1"] + p["b1"], 0.0)
    return h @ p["wm"] + p["bm"], jnp.exp(h @ p["wv"] + p["bv"])


if __name__ == "__main__":
    key = jax.random.PRNGKey(0)
    k_x, k_p = jax.random.split(key)

    # Small but representative shapes: ragged batch (exercises tail padding),
    # non-128-aligned input features, default torch hidden_dim=128, output=16.
    B, input_dim, hidden_dim, output_dim = 300, 200, 128, 16
    x = jax.random.normal(k_x, (B, input_dim), jnp.float32)
    params = init_params(k_p, input_dim, hidden_dim, output_dim)

    q_m_ref, q_v_ref = encoder_ref(x, params)

    # f32 path (tile_b default 256 -> grid of 2 steps: pipelined + megacore-shardable).
    q_m, q_v = encoder_forward(x, params)
    jax.block_until_ready((q_m, q_v))
    assert q_m.shape == (B, output_dim) and q_v.shape == (B, output_dim)
    assert jnp.allclose(q_m, q_m_ref, atol=1e-4, rtol=1e-4)
    assert jnp.allclose(q_v, q_v_ref, atol=1e-4, rtol=1e-4)

    # bf16 inputs/weights with f32 accumulation (cheap HBM-bandwidth win on v6e/v7x).
    q_m_bf, q_v_bf = encoder_forward(x, params, compute_dtype=jnp.bfloat16)
    jax.block_until_ready((q_m_bf, q_v_bf))
    assert bool(jnp.all(jnp.isfinite(q_m_bf))) and bool(jnp.all(jnp.isfinite(q_v_bf)))
    assert jnp.allclose(q_m_bf, q_m_ref, atol=1e-1, rtol=1e-1)
    assert jnp.allclose(q_v_bf, q_v_ref, atol=1e-1, rtol=1e-1)

    print("KERNEL_OK")
</pallas_src>

<mosaic_0001>
module attributes {stable_mosaic.version = 11 : i64} {
  func.func @encoder_kernel(%arg0: i32, %arg1: memref<256x256xf32, #tpu.memory_space<vmem>>, %arg2: memref<256x128xf32, #tpu.memory_space<vmem>>, %arg3: memref<1x128xf32, #tpu.memory_space<vmem>>, %arg4: memref<128x256xf32, #tpu.memory_space<vmem>>, %arg5: memref<1x256xf32, #tpu.memory_space<vmem>>, %arg6: memref<256x256xf32, #tpu.memory_space<vmem>>) attributes {dimension_semantics = [#tpu.dimension_semantics<parallel>], iteration_bounds = array<i64: 2>, scalar_prefetch = 0 : i64, scratch_operands = 0 : i64, tpu.core_type = #tpu.core_type<tc>, window_params = [{transform_indices = @transform_0, window_bounds = array<i64: 256, 256>}, {pipeline_mode = #tpu.pipeline_mode<synchronous>, transform_indices = @transform_1, window_bounds = array<i64: 256, 128>}, {pipeline_mode = #tpu.pipeline_mode<synchronous>, transform_indices = @transform_2, window_bounds = array<i64: 1, 128>}, {pipeline_mode = #tpu.pipeline_mode<synchronous>, transform_indices = @transform_3, window_bounds = array<i64: 128, 256>}, {pipeline_mode = #tpu.pipeline_mode<synchronous>, transform_indices = @transform_4, window_bounds = array<i64: 1, 256>}, {transform_indices = @transform_5, window_bounds = array<i64: 256, 256>}]} {
    %c0 = arith.constant 0 : index
    %c0_0 = arith.constant 0 : index
    %0 = vector.load %arg1[%c0, %c0_0] : memref<256x256xf32, #tpu.memory_space<vmem>>, vector<256x256xf32>
    %c0_1 = arith.constant 0 : index
    %c0_2 = arith.constant 0 : index
    %1 = vector.load %arg2[%c0_1, %c0_2] : memref<256x128xf32, #tpu.memory_space<vmem>>, vector<256x128xf32>
    %cst = arith.constant dense<0.000000e+00> : vector<256x128xf32>
    %2 = tpu.matmul %0, %1, %cst {dimension_numbers = #tpu.dot_dimension_numbers<[1], [0], [0], [1], [0, 0, 1, 1], [], []>} : vector<256x256xf32>, vector<256x128xf32>, vector<256x128xf32> -> vector<256x128xf32>
    %c0_3 = arith.constant 0 : index
    %c0_4 = arith.constant 0 : index
    %3 = vector.load %arg3[%c0_3, %c0_4] : memref<1x128xf32, #tpu.memory_space<vmem>>, vector<1x128xf32>
    %4 = vector.broadcast %3 : vector<1x128xf32> to vector<256x128xf32>
    %5 = arith.addf %2, %4 : vector<256x128xf32>
    %cst_5 = arith.constant 0.000000e+00 : f32
    %6 = vector.broadcast %cst_5 : f32 to vector<256x128xf32>
    %7 = arith.maximumf %5, %6 : vector<256x128xf32>
    %c0_6 = arith.constant 0 : index
    %c0_7 = arith.constant 0 : index
    %8 = vector.load %arg4[%c0_6, %c0_7] : memref<128x256xf32, #tpu.memory_space<vmem>>, vector<128x256xf32>
    %cst_8 = arith.constant dense<0.000000e+00> : vector<256x256xf32>
    %9 = tpu.matmul %7, %8, %cst_8 {dimension_numbers = #tpu.dot_dimension_numbers<[1], [0], [0], [1], [0, 0, 1, 1], [], []>} : vector<256x128xf32>, vector<128x256xf32>, vector<256x256xf32> -> vector<256x256xf32>
    %c0_9 = arith.constant 0 : index
    %c0_10 = arith.constant 0 : index
    %10 = vector.load %arg5[%c0_9, %c0_10] : memref<1x256xf32, #tpu.memory_space<vmem>>, vector<1x256xf32>
    %11 = vector.broadcast %10 : vector<1x256xf32> to vector<256x256xf32>
    %12 = arith.addf %9, %11 : vector<256x256xf32>
    %13 = tpu.iota {dimensions = array<i32: 1>} : vector<256x256xi32>
    %c128_i32 = arith.constant 128 : i32
    %14 = vector.broadcast %c128_i32 : i32 to vector<256x256xi32>
    %15 = arith.cmpi sge, %13, %14 : vector<256x256xi32>
    %16 = math.exp %12 : vector<256x256xf32>
    %17 = arith.select %15, %16, %12 : vector<256x256xi1>, vector<256x256xf32>
    %c0_11 = arith.constant 0 : index
    %c0_12 = arith.constant 0 : index
    %18 = vector.load %arg6[%c0_11, %c0_12] : memref<256x256xf32, #tpu.memory_space<vmem>>, vector<256x256xf32>
    tpu.vector_store %arg6[%c0_11, %c0_12], %17 {strides = array<i32>} : memref<256x256xf32, #tpu.memory_space<vmem>>, vector<256x256xf32>,
    return
  }
  func.func @transform_0(%arg0: i32) -> (i32, i32) {
    %c0_i32 = arith.constant 0 : i32
    %c0_i32_0 = arith.constant 0 : i32
    return %arg0, %c0_i32 : i32, i32
  }
  func.func @transform_1(%arg0: i32) -> (i32, i32) {
    %c0_i32 = arith.constant 0 : i32
    %c0_i32_0 = arith.constant 0 : i32
    %c0_i32_1 = arith.constant 0 : i32
    return %c0_i32, %c0_i32_0 : i32, i32
  }
  func.func @transform_2(%arg0: i32) -> (i32, i32) {
    %c0_i32 = arith.constant 0 : i32
    %c0_i32_0 = arith.constant 0 : i32
    %c0_i32_1 = arith.constant 0 : i32
    return %c0_i32, %c0_i32_0 : i32, i32
  }
  func.func @transform_3(%arg0: i32) -> (i32, i32) {
    %c0_i32 = arith.constant 0 : i32
    %c0_i32_0 = arith.constant 0 : i32
    %c0_i32_1 = arith.constant 0 : i32
    return %c0_i32, %c0_i32_0 : i32, i32
  }
  func.func @transform_4(%arg0: i32) -> (i32, i32) {
    %c0_i32 = arith.constant 0 : i32
    %c0_i32_0 = arith.constant 0 : i32
    %c0_i32_1 = arith.constant 0 : i32
    return %c0_i32, %c0_i32_0 : i32, i32
  }
  func.func @transform_5(%arg0: i32) -> (i32, i32) {
    %c0_i32 = arith.constant 0 : i32
    %c0_i32_0 = arith.constant 0 : i32
    return %arg0, %c0_i32 : i32, i32
  }
}

</mosaic_0001>

<bundles_post_ra>
// kernel: tpu_custom_call.1
= control target key start
LH: loop header
LB: loop body
LE: loop exit
PB: predicated region body
PF: predicated region fallthrough
CT: control target
= control target key end

     0   :  { %10 = vsyncpa [#allocation3], 0  ;;  %s2161_s0 = inlined_call_operand.hbm [shape: f32[512,256], index: 0, kind: input, shape index: {}]   ;;  %s2162_s1 = inlined_call_operand.hbm [shape: f32[256,128], index: 1, kind: input, shape index: {}]   ;;  %s2163_s2 = inlined_call_operand.vmem [shape: f32[1,128], index: 2, kind: input, shape index: {}]   ;;  %s2164_s3 = inlined_call_operand.hbm [shape: f32[128,256], index: 3, kind: input, shape index: {}]   ;;  %s2165_s4 = inlined_call_operand.vmem [shape: f32[1,256], index: 4, kind: input, shape index: {}]   ;;  %s2166_s5 = inlined_call_operand.hbm [shape: f32[512,256], index: 5, kind: output, shape index: {}]  }
   0x1   :  { %12 = vsyncpa [#allocation3 + $0x1], 0 }
   0x2   :  { %13 = vsyncpa [#allocation6], 0 }
   0x3   :  { %14 = vsyncpa [#allocation4], 0 }
   0x4   :  { %16 = vsyncpa [#allocation4 + $0x1], 0  ;;  %s1658_s18 = smov 0   ;;  %s1660_s19 = smov 0  }
   0x5   :  { %s1662_s20 = smov 0   ;;  %s1664_s21 = smov 0  }
   0x6 LB: > { %s1679_s22 = sadd.s32 4294967295, %s1615_s21   ;;  %s1304_s23 = sadd.s32 4294967294, %s1615_s21   ;;  %s1615_s21 = sphi %s1664_s21, %s2190_s21   ;;  %s1611_s20 = sphi %s1662_s20, %s2189_s20   ;;  %s1607_s19 = sphi %s1660_s19, %s2188_s19   ;;  %s1603_s18 = sphi %s1658_s18, %s2187_s18  }
   0x7   : > { %p42_p0 = scmp.ne.s32.totalorder %s1607_s19, %s1603_s18  ;;  %p2167_p1 = scmp.eq.s32.totalorder %s1679_s22, 0 }
   0x8   : > { %p156_p3 = scmp.eq.s32.totalorder %s1304_s23, 1  ;;  %p1305_p5 = scmp.ge.s32.totalorder %s1615_s21, 1 }
   0x9   : > { %p1688_p4 = por %p2167_p1, %p42_p0  ;;  %p163_p7 = scmp.lt.s32.totalorder %s1615_s21, 3 }
   0xa   : > { %p1693_p6 = por %p156_p3, %p42_p0  ;;  %s1617_s27 = smov [#allocation5]  }
   0xb   : > { %s2172_s24 = scalar_select %p1688_p4, 1, 0 }
   0xc   : > { %s2173_s25 = scalar_select %p1693_p6, 1, 0 }
   0xd   : > { %p1698_p8 = pnand %p1305_p5, %p163_p7  ;;  %s175_s28 = sshll.u32 %s1617_s27, 4  ;;  %s176_s28 = int_to_ptr.vmem [resolvable:$true] %s175_s28 }
   0xe   : > { %s1618_s30 = smov [#allocation7]   ;;  %s1478_s7 = scalar_lea.vmem %s176_s28, 4096 }
   0xf   : > { %s2174_s26 = scalar_select %p1698_p8, 1, 0 }
  0x10   : > { %p1341_p9 = pneg %p1698_p8  ;;  %s191_s6 = sshll.u32 %s1618_s30, 4  ;;  %s192_s6 = int_to_ptr.vmem [resolvable:$true] %s191_s6 }
  0x11   : > { %p1479_p13 = scmp.ne.s32.totalorder %s176_s28, %s1478_s7  ;;  %p1486_p5 = scmp.lt.s32.totalorder %s176_s28, %s176_s28 }
  0x12   : > { %p1707_p11 = pnand %p1341_p9, %p2167_p1  ;;  %p1487_p7 = scmp.lt.s32.totalorder %s1478_s7, %s1478_s7 }
  0x14   : > { %p1469_p12 = pneg %p1707_p11  ;;  %p1488_p10 = por %p1487_p7, %p1486_p5 }
  0x16   : > { %p1481_p0 = pnand %p1479_p13, %p1469_p12 }
  0x18   : > { %p1482_p3 = pneg %p1481_p0 }
  0x1a   : > { %p1489_p9 = pnand %p1488_p10, %p1482_p3 }
  0x1c   : > { %1492 = shalt.err (!%p1489_p9)
}
  0x1d   : > { %s1619_s8 = smov 128   ;;  %s1620_s9 = smov 8  }
  0x1e   : > { %1344 = dma.hbm_to_vmem [thread:$0]  (!%p1707_p11), %s2162_s1, 4096, %s176_s28, [#allocation6], %s1619_s8, %s1619_s8, %s1620_s9  }
  0x1f   : > { %s1504_s12 = scalar_lea.vmem %s192_s6, 4096  ;;  %p1512_p2 = scmp.lt.s32.totalorder %s192_s6, %s192_s6 }
  0x20   : > { %p1505_p1 = scmp.ne.s32.totalorder %s192_s6, %s1504_s12  ;;  %p1513_p6 = scmp.lt.s32.totalorder %s1504_s12, %s1504_s12 }
  0x22   : > { %p1507_p13 = pnand %p1505_p1, %p1469_p12  ;;  %p1514_p5 = por %p1513_p6, %p1512_p2 }
  0x24   : > { %p1508_p0 = pneg %p1507_p13 }
  0x26   : > { %p1515_p10 = pnand %p1514_p5, %p1508_p0 }
  0x28   : > { %1518 = shalt.err (!%p1515_p10)
}
  0x29   : > { %s2168_s13 = smov 256   ;;  %s1622_s14 = smov 16  }
  0x2a   : > { %1347 = dma.hbm_to_vmem [thread:$0]  (!%p1707_p11), %s2164_s3, 4096, %s192_s6, [#allocation6], %s2168_s13, %s2168_s13, %s1622_s14  }
  0x2b   : > { %s1733_s17 = sadd.s32 1, %s1615_s21   ;;  %s29_s27 = sadd.s32 1, %s1611_s20 }
  0x2c   : > { %s26_s23 = ssub.s32 %s1615_s21, %s1733_s17  ;;  %p36_p2 = scmp.ne.s32.totalorder %s1611_s20, %s1607_s19 }
  0x2d   : > { %p27_p1 = scmp.eq.s32.totalorder %s26_s23, 0  ;;  %p37_p6 = scmp.eq.s32.totalorder %s1615_s21, 0 }
  0x2e   : > { %p2176_p3 = scmp.eq.s32.totalorder %s1679_s22, 1  ;;  %p1358_p9 = scmp.lt.s32.totalorder %s1615_s21, 2 }
  0x2f   : > { %s1742_s28 = scalar_select %p27_p1, %s1611_s20, %s29_s27  }
  0x30   : > { %p38_p12 = por %p37_p6, %p36_p2  ;;  %p1746_p7 = por %p2176_p3, %p36_p2 }
  0x31   : > { %s208_s30 = sand.u32 1, %s1611_s20   ;;  %s1326_s6 = sshll.u32 %s1615_s21, 13 }
  0x32   : > { %s2177_s29 = scalar_select %p1746_p7, 1, 0 }
  0x33   : > { %s1309_s7 = sshll.u32 %s208_s30, 9  ;;  %s1756_s10 = scalar_lea.hbm %s2161_s0, %s1326_s6 }
  0x34   : > { %s212_s11 = scalar_lea.vmem [#allocation2], %s1309_s7  ;;  %p1760_p11 = pnand %p1358_p9, %p38_p12 }
  0x35   : > { %s220_s12 = sshll.u32 %s212_s11, 4  ;;  %s1764_s16 = scalar_lea.sflag [#allocation3], %s208_s30  ;;  %s1758_s12 = int_to_ptr.vmem [resolvable:$true] %s220_s12 }
  0x36   : > { %s1519_s23 = scalar_lea.hbm %s1756_s10, 8192  ;;  %p1521_p0 = pneg %p1760_p11 }
  0x37   : > { %p1520_p13 = scmp.ne.s32.totalorder %s1756_s10, %s1519_s23  ;;  %s1524_s7 = scalar_lea.hbm %s2161_s0, 16384 }
  0x38   : > { %p1525_p1 = scmp.lt.s32.totalorder %s1756_s10, %s2161_s0  ;;  %p1526_p2 = scmp.lt.s32.totalorder %s1524_s7, %s1519_s23 }
  0x39   : > { %p1522_p5 = pnand %p1521_p0, %p1520_p13 }
  0x3a   : > { %p1527_p6 = por %p1526_p2, %p1525_p1 }
  0x3b   : > { %p1523_p10 = pneg %p1522_p5 }
  0x3d   : > { %p1528_p12 = pnand %p1527_p6, %p1523_p10 }
  0x3f   : > { %1531 = shalt.err (!%p1528_p12)
}
  0x40   : > { %s1532_s30 = scalar_lea.vmem %s1758_s12, 8192  ;;  %s1623_s11 = smov [#allocation2]  }
  0x41   : > { %p1533_p3 = scmp.ne.s32.totalorder %s1758_s12, %s1532_s30  ;;  %s1537_s13 = sshll.u32 %s1623_s11, 4  ;;  %s1538_s13 = int_to_ptr.vmem [resolvable:$false] %s1537_s13 }
  0x42   : > { %s1539_s27 = scalar_lea.vmem %s1538_s13, 16384  ;;  %p1540_p5 = scmp.lt.s32.totalorder %s1758_s12, %s1538_s13 }
  0x43   : > { %p1535_p9 = pnand %p1533_p3, %p1521_p0  ;;  %p1541_p7 = scmp.lt.s32.totalorder %s1539_s27, %s1532_s30 }
  0x45   : > { %p1536_p13 = pneg %p1535_p9  ;;  %p1542_p4 = por %p1541_p7, %p1540_p5 }
  0x47   : > { %p1543_p8 = pnand %p1542_p4, %p1536_p13 }
  0x49   : > { %1546 = shalt.err (!%p1543_p8)
}
  0x4a   : > { %s2179_s23 = smov 256   ;;  %p2180_p0 = scmp.ne.s32.totalorder %s2174_s26, 0 }
  0x4b   : > { %1351 = dma.hbm_to_vmem [thread:$0]  (!%p1760_p11), %s1756_s10, 8192, %s1758_s12, %s1764_s16, %s2179_s23, %s2179_s23, %s1622_s14  }
  0x4c   : > { %232 = sbr.rel (%p2180_p0) target bundleno = 698 (0x2ba), region = 40  ;;  %s1791_s6 = sand.u32 (!%p2180_p0), 1, %s1607_s19  }
  0x4d   : > { %s1314_s13 = sshll.u32 (!%p2180_p0), %s1791_s6, 9  ;;  %s235_s7 = scalar_lea.sflag (!%p2180_p0), [#allocation3], %s1791_s6 }
  0x4e   : > { %s1797_s15 = scalar_lea.vmem (!%p2180_p0), [#allocation2], %s1314_s13  ;;  %p2181_p4 = scmp.ne.s32.totalorder (!%p2180_p0), %s2172_s24, 0 }
  0x51   : > { %1590 = dma.done.wait (%p2181_p4), %s235_s7, 8192  }
  0x52   : > { %1592 = vsyncadd (%p2181_p4), %s235_s7, 4294959104  ;;  %p2182_p8 = scmp.eq.s32.totalorder %s1679_s22, 0 }
  0x54   : > { %1594 = dma.done.wait (%p2182_p8), [#allocation6], 8192   ;;  %p2183_p7 = pmov %p2182_p8 }
  0x55   : > { %v1624_v0 = vmov 0.0   ;;  %v354_v1 = vld [vmem:[#allocation5 + $0x78] sm:$0xff]  ;;  %v353_v2 = vld [vmem:[#allocation5 + $0x70] sm:$0xff]  ;;  %v352_v3 = vld [vmem:[#allocation5 + $0x68] sm:$0xff]  ;;  %s1982_s12 = scalar_lea.vmem [#allocation8], %s1314_s13  ;;  %s1328_s16 = sshll.u32 %s1679_s22, 13 }
  0x56   : > { %1596 = vsyncadd (%p2183_p7), [#allocation6], 4294959104  ;;  %378 = vmatprep.subr.mxu0 %v1624_v0  ;;  %743 = vmatprep.mubr.f32.mxu1 %v1624_v0  ;;  %v351_v4 = vld [vmem:[#allocation5 + $0x60] sm:$0xff]  ;;  %v350_v5 = vld [vmem:[#allocation5 + $0x58] sm:$0xff]  ;;  %s1212_s8 = sshll.u32 %s1982_s12, 4  ;;  %s2115_s11 = scalar_lea.hbm %s2166_s5, %s1328_s16  ;;  %s2117_s8 = int_to_ptr.vmem [resolvable:$true] %s1212_s8 }
  0x57   : > { %379 = vmatpush1.msra.mxu0 %v354_v1  ;;  %v349_v6 = vld [vmem:[#allocation5 + $0x50] sm:$0xff]  ;;  %v348_v7 = vld [vmem:[#allocation5 + $0x48] sm:$0xff]  ;;  %v347_v9 = vld [vmem:[#allocation5 + $0x40] sm:$0xff]  ;;  %s1198_s27 = scalar_lea.sflag [#allocation4], %s1791_s6  ;;  %s1547_s23 = scalar_lea.vmem %s2117_s8, 8192 }
  0x58   : > { %380 = vmatprep.subr.mxu0 %v1624_v0  ;;  %v276_v8 = vld [vmem:[%s1797_s15 + $0x8] sm:$0xff]  ;;  %v346_v10 = vld [vmem:[#allocation5 + $0x38] sm:$0xff]  ;;  %v345_v11 = vld [vmem:[#allocation5 + $0x30] sm:$0xff]  ;;  %p1548_p11 = scmp.ne.s32.totalorder %s2117_s8, %s1547_s23  ;;  %p2184_p10 = scmp.ne.s32.totalorder %s2177_s29, 0 }
  0x59   : > { %381 = vmatpush1.msra.mxu0 %v353_v2  ;;  %442 = vmatprep.mubr.f32.mxu0 %v276_v8  ;;  %v344_v12 = vld [vmem:[#allocation5 + $0x28] sm:$0xff]  ;;  %v343_v13 = vld [vmem:[#allocation5 + $0x20] sm:$0xff]  ;;  %v342_v14 = vld [vmem:[#allocation5 + $0x18] sm:$0xff]  ;;  %s1625_s22 = smov [#allocation8]  }
  0x5a   : > { %382 = vmatprep.subr.mxu0 %v1624_v0  ;;  %v341_v15 = vld [vmem:[#allocation5 + $0x10] sm:$0xff]  ;;  %v340_v16 = vld [vmem:[#allocation5 + $0x8] sm:$0xff]  ;;  %v339_v17 = vld [vmem:[#allocation5] sm:$0xff]  ;;  %p1549_p1 = pnand %p1548_p11, %p2184_p10  ;;  %s1551_s13 = sshll.u32 %s1625_s22, 4  ;;  %s1552_s13 = int_to_ptr.vmem [resolvable:$false] %s1551_s13 }
  0x5b   : > { %383 = vmatpush1.msra.mxu0 %v352_v3  ;;  %v370_v18 = vld [vmem:[#allocation5 + $0xf8] sm:$0xff]  ;;  %v369_v19 = vld [vmem:[#allocation5 + $0xf0] sm:$0xff]  ;;  %v368_v20 = vld [vmem:[#allocation5 + $0xe8] sm:$0xff]  ;;  %s1553_s7 = scalar_lea.vmem %s1552_s13, 16384  ;;  %p1554_p6 = scmp.lt.s32.totalorder %s2117_s8, %s1552_s13 }
  0x5c   : > { %384 = vmatprep.subr.mxu0 %v1624_v0  ;;  %v367_v21 = vld [vmem:[#allocation5 + $0xe0] sm:$0xff]  ;;  %v366_v22 = vld [vmem:[#allocation5 + $0xd8] sm:$0xff]  ;;  %v365_v23 = vld [vmem:[#allocation5 + $0xd0] sm:$0xff]  ;;  %p1550_p2 = pneg %p1549_p1  ;;  %p1555_p12 = scmp.lt.s32.totalorder %s1553_s7, %s1547_s23 }
  0x5d   : > { %385 = vmatpush1.msra.mxu0 %v351_v4  ;;  %v364_v24 = vld [vmem:[#allocation5 + $0xc8] sm:$0xff]  ;;  %v363_v25 = vld [vmem:[#allocation5 + $0xc0] sm:$0xff]  ;;  %v362_v26 = vld [vmem:[#allocation5 + $0xb8] sm:$0xff] }
  0x5e   : > { %386 = vmatprep.subr.mxu0 %v1624_v0  ;;  %v361_v27 = vld [vmem:[#allocation5 + $0xb0] sm:$0xff]  ;;  %v360_v28 = vld [vmem:[#allocation5 + $0xa8] sm:$0xff]  ;;  %v359_v29 = vld [vmem:[#allocation5 + $0xa0] sm:$0xff]  ;;  %p1556_p3 = por %p1555_p12, %p1554_p6 }
  0x5f   : > { %387 = vmatpush1.msra.mxu0 %v350_v5  ;;  %v358_v30 = vld [vmem:[#allocation5 + $0x98] sm:$0xff]  ;;  %v357_v31 = vld [vmem:[#allocation5 + $0x90] sm:$0xff]  ;;  %v356_v32 = vld [vmem:[#allocation5 + $0x88] sm:$0xff] }
  0x60   : > { %388 = vmatprep.subr.mxu0 %v1624_v0  ;;  %v355_v33 = vld [vmem:[#allocation5 + $0x80] sm:$0xff]  ;;  %v666_v34 = vld [vmem:[#allocation7 + $0xf8] sm:$0xff]  ;;  %v665_v35 = vld [vmem:[#allocation7 + $0xf0] sm:$0xff]  ;;  %p1557_p9 = pnand %p1556_p3, %p1550_p2 }
  0x61   : > { %389 = vmatpush1.msra.mxu0 %v349_v6  ;;  %v664_v36 = vld [vmem:[#allocation7 + $0xe8] sm:$0xff]  ;;  %v275_v37 = vld [vmem:[%s1797_s15] sm:$0xff]  ;;  %679 = vmatprep.subr.mxu1 %v666_v34  ;;  %v278_v39 = vld [vmem:[%s1797_s15 + $0x18] sm:$0xff] }
  0x62   : > { %390 = vmatprep.subr.mxu0 %v1624_v0  ;;  %v663_v38 = vld [vmem:[#allocation7 + $0xe0] sm:$0xff]  ;;  %680 = vmatpush1.msra.mxu1 %v665_v35  ;;  %v662_v40 = vld [vmem:[#allocation7 + $0xd8] sm:$0xff]  ;;  %v661_v41 = vld [vmem:[#allocation7 + $0xd0] sm:$0xff] }
  0x63   : > { %391 = vmatpush1.msra.mxu0 %v348_v7  ;;  %681 = vmatprep.subr.mxu1 %v664_v36  ;;  %v660_v42 = vld [vmem:[#allocation7 + $0xc8] sm:$0xff]  ;;  %v277_v43 = vld [vmem:[%s1797_s15 + $0x10] sm:$0xff]  ;;  %v659_v44 = vld [vmem:[#allocation7 + $0xc0] sm:$0xff] }
  0x64   : > { %392 = vmatprep.subr.mxu0 %v1624_v0  ;;  %682 = vmatpush1.msra.mxu1 %v663_v38  ;;  %v280_v45 = vld [vmem:[%s1797_s15 + $0x28] sm:$0xff]  ;;  %v658_v46 = vld [vmem:[#allocation7 + $0xb8] sm:$0xff]  ;;  %v657_v47 = vld [vmem:[#allocation7 + $0xb0] sm:$0xff] }
  0x65   : > { %393 = vmatpush1.msra.mxu0 %v347_v9  ;;  %683 = vmatprep.subr.mxu1 %v662_v40  ;;  %v656_v48 = vld [vmem:[#allocation7 + $0xa8] sm:$0xff]  ;;  %v279_v49 = vld [vmem:[%s1797_s15 + $0x20] sm:$0xff]  ;;  %v282_v51 = vld [vmem:[%s1797_s15 + $0x38] sm:$0xff] }
  0x66   : > { %394 = vmatprep.subr.mxu0 %v1624_v0  ;;  %684 = vmatpush1.msra.mxu1 %v661_v41  ;;  %v655_v50 = vld [vmem:[#allocation7 + $0xa0] sm:$0xff]  ;;  %v654_v52 = vld [vmem:[#allocation7 + $0x98] sm:$0xff]  ;;  %v653_v53 = vld [vmem:[#allocation7 + $0x90] sm:$0xff] }
  0x67   : > { %395 = vmatpush1.msra.mxu0 %v346_v10  ;;  %685 = vmatprep.subr.mxu1 %v660_v42  ;;  %v652_v54 = vld [vmem:[#allocation7 + $0x88] sm:$0xff]  ;;  %v281_v55 = vld [vmem:[%s1797_s15 + $0x30] sm:$0xff]  ;;  %v651_v56 = vld [vmem:[#allocation7 + $0x80] sm:$0xff] }
  0x68   : > { %396 = vmatprep.subr.mxu0 %v1624_v0  ;;  %686 = vmatpush1.msra.mxu1 %v659_v44  ;;  %v284_v57 = vld [vmem:[%s1797_s15 + $0x48] sm:$0xff]  ;;  %v650_v58 = vld [vmem:[#allocation7 + $0x78] sm:$0xff]  ;;  %v649_v59 = vld [vmem:[#allocation7 + $0x70] sm:$0xff] }
  0x69   : > { %397 = vmatpush1.msra.mxu0 %v345_v11  ;;  %687 = vmatprep.subr.mxu1 %v658_v46  ;;  %v648_v60 = vld [vmem:[#allocation7 + $0x68] sm:$0xff]  ;;  %v283_v61 = vld [vmem:[%s1797_s15 + $0x40] sm:$0xff]  ;;  %v286_v63 = vld [vmem:[%s1797_s15 + $0x58] sm:$0xff] }
  0x6a   : > { %398 = vmatprep.subr.mxu0 %v1624_v0  ;;  %688 = vmatpush1.msra.mxu1 %v657_v47  ;;  %v647_v62 = vld [vmem:[#allocation7 + $0x60] sm:$0xff]  ;;  %v646_v1 = vld [vmem:[#allocation7 + $0x58] sm:$0xff]  ;;  %v645_v2 = vld [vmem:[#allocation7 + $0x50] sm:$0xff] }
  0x6b   : > { %399 = vmatpush1.msra.mxu0 %v344_v12  ;;  %689 = vmatprep.subr.mxu1 %v656_v48  ;;  %v644_v3 = vld [vmem:[#allocation7 + $0x48] sm:$0xff]  ;;  %v285_v4 = vld [vmem:[%s1797_s15 + $0x50] sm:$0xff]  ;;  %v643_v5 = vld [vmem:[#allocation7 + $0x40] sm:$0xff] }
  0x6c   : > { %400 = vmatprep.subr.mxu0 %v1624_v0  ;;  %690 = vmatpush1.msra.mxu1 %v655_v50  ;;  %v288_v6 = vld [vmem:[%s1797_s15 + $0x68] sm:$0xff]  ;;  %v642_v7 = vld [vmem:[#allocation7 + $0x38] sm:$0xff]  ;;  %v641_v8 = vld [vmem:[#allocation7 + $0x30] sm:$0xff] }
  0x6d   : > { %401 = vmatpush1.msra.mxu0 %v343_v13  ;;  %691 = vmatprep.subr.mxu1 %v654_v52  ;;  %v640_v9 = vld [vmem:[#allocation7 + $0x28] sm:$0xff]  ;;  %v287_v10 = vld [vmem:[%s1797_s15 + $0x60] sm:$0xff]  ;;  %v290_v11 = vld [vmem:[%s1797_s15 + $0x78] sm:$0xff] }
  0x6e   : > { %402 = vmatprep.subr.mxu0 %v1624_v0  ;;  %692 = vmatpush1.msra.mxu1 %v653_v53  ;;  %v289_v12 = vld [vmem:[%s1797_s15 + $0x70] sm:$0xff]  ;;  %v292_v13 = vld [vmem:[%s1797_s15 + $0x88] sm:$0xff]  ;;  %v635_v38 = vld [vmem:[#allocation7] sm:$0xff] }
  0x6f   : > { %403 = vmatpush1.msra.mxu0 %v342_v14  ;;  %693 = vmatprep.subr.mxu1 %v652_v54  ;;  %v291_v14 = vld [vmem:[%s1797_s15 + $0x80] sm:$0xff]  ;;  %v309_v34 = vld [vmem:[%s1797_s15 + $0x110] sm:$0xff]  ;;  %v312_v36 = vld [vmem:[%s1797_s15 + $0x128] sm:$0xff] }
  0x70   : > { %404 = vmatprep.subr.mxu0 %v1624_v0  ;;  %694 = vmatpush1.msra.mxu1 %v651_v56  ;;  %v637_v35 = vld [vmem:[#allocation7 + $0x10] sm:$0xff]  ;;  %v314_v40 = vld [vmem:[%s1797_s15 + $0x138] sm:$0xff]  ;;  %v316_v42 = vld [vmem:[%s1797_s15 + $0x148] sm:$0xff] }
  0x71   : > { %405 = vmatpush1.msra.mxu0 %v341_v15  ;;  %695 = vmatprep.subr.mxu1 %v650_v58  ;;  %v294_v15 = vld [vmem:[%s1797_s15 + $0x98] sm:$0xff]  ;;  %v313_v41 = vld [vmem:[%s1797_s15 + $0x130] sm:$0xff]  ;;  %v320_v46 = vld [vmem:[%s1797_s15 + $0x168] sm:$0xff] }
  0x72   : > { %406 = vmatprep.subr.mxu0 %v1624_v0  ;;  %696 = vmatpush1.msra.mxu1 %v649_v59  ;;  %v318_v44 = vld [vmem:[%s1797_s15 + $0x158] sm:$0xff]  ;;  %v319_v47 = vld [vmem:[%s1797_s15 + $0x160] sm:$0xff]  ;;  %v324_v50 = vld [vmem:[%s1797_s15 + $0x188] sm:$0xff] }
  0x73   : > { %407 = vmatpush1.msra.mxu0 %v340_v16  ;;  %697 = vmatprep.subr.mxu1 %v648_v60  ;;  %v293_v16 = vld [vmem:[%s1797_s15 + $0x90] sm:$0xff]  ;;  %v322_v48 = vld [vmem:[%s1797_s15 + $0x178] sm:$0xff]  ;;  %v328_v54 = vld [vmem:[%s1797_s15 + $0x1a8] sm:$0xff] }
  0x74   : > { %408 = vmatprep.subr.mxu0 %v1624_v0  ;;  %698 = vmatpush1.msra.mxu1 %v647_v62  ;;  %v326_v52 = vld [vmem:[%s1797_s15 + $0x198] sm:$0xff]  ;;  %v325_v53 = vld [vmem:[%s1797_s15 + $0x190] sm:$0xff]  ;;  %v332_v58 = vld [vmem:[%s1797_s15 + $0x1c8] sm:$0xff] }
  0x75   : > { %409 = vmatpush1.msra.mxu0 %v339_v17  ;;  %699 = vmatprep.subr.mxu1 %v646_v1  ;;  %v296_v17 = vld [vmem:[%s1797_s15 + $0xa8] sm:$0xff]  ;;  %v330_v56 = vld [vmem:[%s1797_s15 + $0x1b8] sm:$0xff]  ;;  %v331_v59 = vld [vmem:[%s1797_s15 + $0x1c0] sm:$0xff] }
  0x76   : > { %410 = vmatprep.subr.mxu0 %v1624_v0  ;;  %700 = vmatpush1.msra.mxu1 %v645_v2  ;;  %v334_v60 = vld [vmem:[%s1797_s15 + $0x1d8] sm:$0xff]  ;;  %v336_v62 = vld [vmem:[%s1797_s15 + $0x1e8] sm:$0xff]  ;;  %v337_v2 = vld [vmem:[%s1797_s15 + $0x1f0] sm:$0xff] }
  0x77   : > { %411 = vmatpush2.msra.mxu0 %v370_v18  ;;  %701 = vmatprep.subr.mxu1 %v644_v3  ;;  %v295_v18 = vld [vmem:[%s1797_s15 + $0xa0] sm:$0xff]  ;;  %v338_v1 = vld [vmem:[%s1797_s15 + $0x1f8] sm:$0xff] }
  0x78   : > { %412 = vmatprep.subr.mxu0 %v1624_v0  ;;  %702 = vmatpush1.msra.mxu1 %v643_v5  ;;  %v1907_v3 = vld [vmem:[%s2163_s2] ss:$0 sm:$0xff] }
  0x79   : > { %413 = vmatpush2.msra.mxu0 %v369_v19  ;;  %703 = vmatprep.subr.mxu1 %v642_v7  ;;  %v298_v19 = vld [vmem:[%s1797_s15 + $0xb8] sm:$0xff] }
  0x7a   : > { %414 = vmatprep.subr.mxu0 %v1624_v0  ;;  %704 = vmatpush1.msra.mxu1 %v641_v8 }
  0x7b   : > { %415 = vmatpush2.msra.mxu0 %v368_v20  ;;  %705 = vmatprep.subr.mxu1 %v640_v9  ;;  %v297_v20 = vld [vmem:[%s1797_s15 + $0xb0] sm:$0xff] }
  0x7c   : > { %416 = vmatprep.subr.mxu0 %v1624_v0 }
  0x7d   : > { %417 = vmatpush2.msra.mxu0 %v367_v21  ;;  %v300_v21 = vld [vmem:[%s1797_s15 + $0xc8] sm:$0xff] }
  0x7e   : > { %418 = vmatprep.subr.mxu0 %v1624_v0 }
  0x7f   : > { %419 = vmatpush2.msra.mxu0 %v366_v22  ;;  %v299_v22 = vld [vmem:[%s1797_s15 + $0xc0] sm:$0xff] }
  0x80   : > { %420 = vmatprep.subr.mxu0 %v1624_v0 }
  0x81   : > { %421 = vmatpush2.msra.mxu0 %v365_v23  ;;  %v302_v23 = vld [vmem:[%s1797_s15 + $0xd8] sm:$0xff] }
  0x82   : > { %422 = vmatprep.subr.mxu0 %v1624_v0 }
  0x83   : > { %423 = vmatpush2.msra.mxu0 %v364_v24  ;;  %v301_v24 = vld [vmem:[%s1797_s15 + $0xd0] sm:$0xff] }
  0x84   : > { %424 = vmatprep.subr.mxu0 %v1624_v0 }
  0x85   : > { %425 = vmatpush2.msra.mxu0 %v363_v25  ;;  %v304_v25 = vld [vmem:[%s1797_s15 + $0xe8] sm:$0xff] }
  0x86   : > { %426 = vmatprep.subr.mxu0 %v1624_v0 }
  0x87   : > { %427 = vmatpush2.msra.mxu0 %v362_v26  ;;  %v303_v26 = vld [vmem:[%s1797_s15 + $0xe0] sm:$0xff] }
  0x88   : > { %428 = vmatprep.subr.mxu0 %v1624_v0 }
  0x89   : > { %429 = vmatpush2.msra.mxu0 %v361_v27  ;;  %v306_v27 = vld [vmem:[%s1797_s15 + $0xf8] sm:$0xff] }
  0x8a   : > { %430 = vmatprep.subr.mxu0 %v1624_v0 }
  0x8b   : > { %431 = vmatpush2.msra.mxu0 %v360_v28  ;;  %v305_v28 = vld [vmem:[%s1797_s15 + $0xf0] sm:$0xff] }
  0x8c   : > { %432 = vmatprep.subr.mxu0 %v1624_v0 }
  0x8d   : > { %433 = vmatpush2.msra.mxu0 %v359_v29  ;;  %v308_v29 = vld [vmem:[%s1797_s15 + $0x108] sm:$0xff] }
  0x8e   : > { %434 = vmatprep.subr.mxu0 %v1624_v0 }
  0x8f   : > { %435 = vmatpush2.msra.mxu0 %v358_v30  ;;  %v307_v30 = vld [vmem:[%s1797_s15 + $0x100] sm:$0xff] }
  0x90   : > { %436 = vmatprep.subr.mxu0 %v1624_v0 }
  0x91   : > { %437 = vmatpush2.msra.mxu0 %v357_v31  ;;  %v310_v31 = vld [vmem:[%s1797_s15 + $0x118] sm:$0xff] }
  0x92   : > { %438 = vmatprep.subr.mxu0 %v1624_v0 }
  0x93   : > { %439 = vmatpush2.msra.mxu0 %v356_v32  ;;  %v639_v32 = vld [vmem:[#allocation7 + $0x20] sm:$0xff] }
  0x94   : > { %440 = vmatprep.subr.mxu0 %v1624_v0  ;;  %706 = vmatpush1.msra.mxu1 %v639_v32 }
  0x95   : > { %441 = vmatpush2.msra.mxu0 %v355_v33  ;;  %v638_v33 = vld [vmem:[#allocation7 + $0x18] sm:$0xff] }
  0x96   : > { %443 = vmatmul.mubr.f32.vlgmr.msra.gmra.mxu0 %v275_v37  ;;  %707 = vmatprep.subr.mxu1 %v638_v33  ;;  %v636_v37 = vld [vmem:[#allocation7 + $0x8] sm:$0xff] }
  0x97   : > { %447 = vmatprep.mubr.f32.mxu0 %v278_v39  ;;  %708 = vmatpush1.msra.mxu1 %v637_v35  ;;  %v311_v39 = vld [vmem:[%s1797_s15 + $0x120] sm:$0xff] }
  0x98   : > { %709 = vmatprep.subr.mxu1 %v636_v37 }
  0x99   : > { %710 = vmatpush1.msra.mxu1 %v635_v38 }
  0x9a   : > { %448 = vmatmul.mubr.f32.gmra.mxu0 %v277_v43  ;;  %v315_v43 = vld [vmem:[%s1797_s15 + $0x140] sm:$0xff] }
  0x9b   : > { %452 = vmatprep.mubr.f32.mxu0 %v280_v45  ;;  %v317_v45 = vld [vmem:[%s1797_s15 + $0x150] sm:$0xff] }
  0x9e   : > { %453 = vmatmul.mubr.f32.gmra.mxu0 %v279_v49  ;;  %v321_v49 = vld [vmem:[%s1797_s15 + $0x170] sm:$0xff] }
  0x9f   : > { %457 = vmatprep.mubr.f32.mxu0 %v282_v51  ;;  %v323_v51 = vld [vmem:[%s1797_s15 + $0x180] sm:$0xff] }
  0xa2   : > { %458 = vmatmul.mubr.f32.gmra.mxu0 %v281_v55  ;;  %v327_v55 = vld [vmem:[%s1797_s15 + $0x1a0] sm:$0xff] }
  0xa3   : > { %462 = vmatprep.mubr.f32.mxu0 %v284_v57  ;;  %v329_v57 = vld [vmem:[%s1797_s15 + $0x1b0] sm:$0xff] }
  0xa6   : > { %463 = vmatmul.mubr.f32.gmra.mxu0 %v283_v61  ;;  %v333_v61 = vld [vmem:[%s1797_s15 + $0x1d0] sm:$0xff] }
  0xa7   : > { %467 = vmatprep.mubr.f32.mxu0 %v286_v63  ;;  %v335_v63 = vld [vmem:[%s1797_s15 + $0x1e0] sm:$0xff] }
  0xaa   : > { %468 = vmatmul.mubr.f32.gmra.mxu0 %v285_v4 }
  0xab   : > { %472 = vmatprep.mubr.f32.mxu0 %v288_v6 }
  0xae   : > { %473 = vmatmul.mubr.f32.gmra.mxu0 %v287_v10 }
  0xaf   : > { %477 = vmatprep.mubr.f32.mxu0 %v290_v11 }
  0xb2   : > { %478 = vmatmul.mubr.f32.gmra.mxu0 %v289_v12 }
  0xb3   : > { %482 = vmatprep.mubr.f32.mxu0 %v292_v13 }
  0xb6   : > { %483 = vmatmul.mubr.f32.gmra.mxu0 %v291_v14 }
  0xb7   : > { %487 = vmatprep.mubr.f32.mxu0 %v294_v15 }
  0xba   : > { %488 = vmatmul.mubr.f32.gmra.mxu0 %v293_v16 }
  0xbb   : > { %492 = vmatprep.mubr.f32.mxu0 %v296_v17 }
  0xbe   : > { %493 = vmatmul.mubr.f32.gmra.mxu0 %v295_v18 }
  0xbf   : > { %497 = vmatprep.mubr.f32.mxu0 %v298_v19 }
  0xc2   : > { %498 = vmatmul.mubr.f32.gmra.mxu0 %v297_v20 }
  0xc3   : > { %502 = vmatprep.mubr.f32.mxu0 %v300_v21 }
  0xc6   : > { %503 = vmatmul.mubr.f32.gmra.mxu0 %v299_v22 }
  0xc7   : > { %507 = vmatprep.mubr.f32.mxu0 %v302_v23 }
  0xca   : > { %508 = vmatmul.mubr.f32.gmra.mxu0 %v301_v24 }
  0xcb   : > { %512 = vmatprep.mubr.f32.mxu0 %v304_v25 }
  0xce   : > { %513 = vmatmul.mubr.f32.gmra.mxu0 %v303_v26 }
  0xcf   : > { %517 = vmatprep.mubr.f32.mxu0 %v306_v27 }
  0xd2   : > { %518 = vmatmul.mubr.f32.gmra.mxu0 %v305_v28 }
  0xd3   : > { %522 = vmatprep.mubr.f32.mxu0 %v308_v29 }
  0xd6   : > { %523 = vmatmul.mubr.f32.gmra.mxu0 %v307_v30 }
  0xd7   : > { %527 = vmatprep.mubr.f32.mxu0 %v310_v31 }
  0xda   : > { %528 = vmatmul.mubr.f32.gmra.mxu0 %v309_v34 }
  0xdb   : > { %532 = vmatprep.mubr.f32.mxu0 %v312_v36 }
  0xde   : > { %533 = vmatmul.mubr.f32.gmra.mxu0 %v311_v39 }
  0xdf   : > { %537 = vmatprep.mubr.f32.mxu0 %v314_v40 }
  0xe2   : > { %538 = vmatmul.mubr.f32.gmra.mxu0 %v313_v41 }
  0xe3   : > { %542 = vmatprep.mubr.f32.mxu0 %v316_v42 }
  0xe6   : > { %543 = vmatmul.mubr.f32.gmra.mxu0 %v315_v43 }
  0xe7   : > { %547 = vmatprep.mubr.f32.mxu0 %v318_v44 }
  0xea   : > { %548 = vmatmul.mubr.f32.gmra.mxu0 %v317_v45 }
  0xeb   : > { %552 = vmatprep.mubr.f32.mxu0 %v320_v46 }
  0xee   : > { %553 = vmatmul.mubr.f32.gmra.mxu0 %v319_v47 }
  0xef   : > { %557 = vmatprep.mubr.f32.mxu0 %v322_v48 }
  0xf2   : > { %558 = vmatmul.mubr.f32.gmra.mxu0 %v321_v49 }
  0xf3   : > { %562 = vmatprep.mubr.f32.mxu0 %v324_v50 }
  0xf6   : > { %563 = vmatmul.mubr.f32.gmra.mxu0 %v323_v51 }
  0xf7   : > { %567 = vmatprep.mubr.f32.mxu0 %v326_v52 }
  0xfa   : > { %568 = vmatmul.mubr.f32.gmra.mxu0 %v325_v53 }
  0xfb   : > { %572 = vmatprep.mubr.f32.mxu0 %v328_v54 }
  0xfe   : > { %573 = vmatmul.mubr.f32.gmra.mxu0 %v327_v55 }
  0xff   : > { %577 = vmatprep.mubr.f32.mxu0 %v330_v56 }
 0x102   : > { %578 = vmatmul.mubr.f32.gmra.mxu0 %v329_v57 }
 0x103   : > { %582 = vmatprep.mubr.f32.mxu0 %v332_v58 }
 0x106   : > { %583 = vmatmul.mubr.f32.gmra.mxu0 %v331_v59 }
 0x107   : > { %587 = vmatprep.mubr.f32.mxu0 %v334_v60 }
 0x10a   : > { %588 = vmatmul.mubr.f32.gmra.mxu0 %v333_v61 }
 0x10b   : > { %592 = vmatprep.mubr.f32.mxu0 %v336_v62 }
 0x10e   : > { %593 = vmatmul.mubr.f32.gmra.mxu0 %v335_v63 }
 0x10f   : > { %597 = vmatprep.mubr.f32.mxu0 %v338_v1 }
 0x112   : > { %598 = vmatmul.mubr.f32.gmra.mxu0 %v337_v2 }
 0x156   : > { %v444_v4 = vpop.f32.mrf.mxu0 }
 0x157   : > { %v445_v5 = vadd.f32 %v1907_v3, %v444_v4 }
 0x158   : > { %v446_v6 = vpop.f32.mrf.mxu0 }
 0x159   : > { %v603_v7 = vmax.f32 %v445_v5, 0.0 }
 0x15a   : > { %v449_v8 = vpop.f32.mrf.mxu0 }
 0x15b   : > { %v450_v9 = vadd.f32 %v1907_v3, %v449_v8  ;;  %744 = vmatmul.mubr.f32.vlgmr.msra.gmra.mxu1 %v603_v7 }
 0x15c   : > { %v451_v10 = vpop.f32.mrf.mxu0  ;;  %749 = vmatprep.mubr.f32.mxu1 %v1624_v0 }
 0x15d   : > { %v604_v11 = vmax.f32 %v450_v9, 0.0 }
 0x15e   : > { %v454_v12 = vpop.f32.mrf.mxu0 }
 0x15f   : > { %v455_v13 = vadd.f32 %v1907_v3, %v454_v12  ;;  %750 = vmatmul.mubr.f32.gmra.mxu1 %v604_v11 }
 0x160   : > { %v456_v14 = vpop.f32.mrf.mxu0  ;;  %755 = vmatprep.mubr.f32.mxu1 %v1624_v0 }
 0x161   : > { %v605_v15 = vmax.f32 %v455_v13, 0.0 }
 0x162   : > { %v459_v16 = vpop.f32.mrf.mxu0 }
 0x163   : > { %v460_v17 = vadd.f32 %v1907_v3, %v459_v16  ;;  %756 = vmatmul.mubr.f32.gmra.mxu1 %v605_v15 }
 0x164   : > { %v461_v18 = vpop.f32.mrf.mxu0  ;;  %761 = vmatprep.mubr.f32.mxu1 %v1624_v0 }
 0x165   : > { %v606_v19 = vmax.f32 %v460_v17, 0.0 }
 0x166   : > { %v464_v20 = vpop.f32.mrf.mxu0 }
 0x167   : > { %v465_v21 = vadd.f32 %v1907_v3, %v464_v20  ;;  %762 = vmatmul.mubr.f32.gmra.mxu1 %v606_v19 }
 0x168   : > { %v466_v22 = vpop.f32.mrf.mxu0  ;;  %767 = vmatprep.mubr.f32.mxu1 %v1624_v0 }
 0x169   : > { %v607_v23 = vmax.f32 %v465_v21, 0.0 }
 0x16a   : > { %v469_v24 = vpop.f32.mrf.mxu0 }
 0x16b   : > { %v470_v25 = vadd.f32 %v1907_v3, %v469_v24  ;;  %768 = vmatmul.mubr.f32.gmra.mxu1 %v607_v23 }
 0x16c   : > { %v471_v26 = vpop.f32.mrf.mxu0  ;;  %773 = vmatprep.mubr.f32.mxu1 %v1624_v0 }
 0x16d   : > { %v608_v27 = vmax.f32 %v470_v25, 0.0 }
 0x16e   : > { %v474_v28 = vpop.f32.mrf.mxu0 }
 0x16f   : > { %v475_v29 = vadd.f32 %v1907_v3, %v474_v28  ;;  %774 = vmatmul.mubr.f32.gmra.mxu1 %v608_v27 }
 0x170   : > { %v476_v30 = vpop.f32.mrf.mxu0  ;;  %779 = vmatprep.mubr.f32.mxu1 %v1624_v0 }
 0x171   : > { %v609_v31 = vmax.f32 %v475_v29, 0.0 }
 0x172   : > { %v479_v32 = vpop.f32.mrf.mxu0 }
 0x173   : > { %v480_v33 = vadd.f32 %v1907_v3, %v479_v32  ;;  %780 = vmatmul.mubr.f32.gmra.mxu1 %v609_v31 }
 0x174   : > { %v481_v34 = vpop.f32.mrf.mxu0  ;;  %785 = vmatprep.mubr.f32.mxu1 %v1624_v0 }
 0x175   : > { %v610_v35 = vmax.f32 %v480_v33, 0.0 }
 0x176   : > { %v484_v36 = vpop.f32.mrf.mxu0 }
 0x177   : > { %v485_v37 = vadd.f32 %v1907_v3, %v484_v36  ;;  %786 = vmatmul.mubr.f32.gmra.mxu1 %v610_v35 }
 0x178   : > { %v486_v38 = vpop.f32.mrf.mxu0  ;;  %791 = vmatprep.mubr.f32.mxu1 %v1624_v0 }
 0x179   : > { %v611_v39 = vmax.f32 %v485_v37, 0.0 }
 0x17a   : > { %v489_v40 = vpop.f32.mrf.mxu0 }
 0x17b   : > { %v490_v41 = vadd.f32 %v1907_v3, %v489_v40  ;;  %792 = vmatmul.mubr.f32.gmra.mxu1 %v611_v39 }
 0x17c   : > { %v491_v42 = vpop.f32.mrf.mxu0  ;;  %797 = vmatprep.mubr.f32.mxu1 %v1624_v0 }
 0x17d   : > { %v612_v43 = vmax.f32 %v490_v41, 0.0 }
 0x17e   : > { %v494_v44 = vpop.f32.mrf.mxu0 }
 0x17f   : > { %v495_v45 = vadd.f32 %v1907_v3, %v494_v44  ;;  %798 = vmatmul.mubr.f32.gmra.mxu1 %v612_v43 }
 0x180   : > { %v496_v46 = vpop.f32.mrf.mxu0  ;;  %803 = vmatprep.mubr.f32.mxu1 %v1624_v0 }
 0x181   : > { %v613_v47 = vmax.f32 %v495_v45, 0.0 }
 0x182   : > { %v499_v48 = vpop.f32.mrf.mxu0 }
 0x183   : > { %v500_v49 = vadd.f32 %v1907_v3, %v499_v48  ;;  %804 = vmatmul.mubr.f32.gmra.mxu1 %v613_v47 }
 0x184   : > { %v501_v50 = vpop.f32.mrf.mxu0  ;;  %809 = vmatprep.mubr.f32.mxu1 %v1624_v0 }
 0x185   : > { %v614_v51 = vmax.f32 %v500_v49, 0.0 }
 0x186   : > { %v504_v52 = vpop.f32.mrf.mxu0 }
 0x187   : > { %v505_v53 = vadd.f32 %v1907_v3, %v504_v52  ;;  %810 = vmatmul.mubr.f32.gmra.mxu1 %v614_v51 }
 0x188   : > { %v506_v54 = vpop.f32.mrf.mxu0  ;;  %815 = vmatprep.mubr.f32.mxu1 %v1624_v0 }
 0x189   : > { %v615_v55 = vmax.f32 %v505_v53, 0.0 }
 0x18a   : > { %v509_v56 = vpop.f32.mrf.mxu0 }
 0x18b   : > { %v510_v57 = vadd.f32 %v1907_v3, %v509_v56  ;;  %816 = vmatmul.mubr.f32.gmra.mxu1 %v615_v55 }
 0x18c   : > { %v511_v58 = vpop.f32.mrf.mxu0  ;;  %821 = vmatprep.mubr.f32.mxu1 %v1624_v0 }
 0x18d   : > { %v616_v59 = vmax.f32 %v510_v57, 0.0 }
 0x18e   : > { %v514_v60 = vpop.f32.mrf.mxu0 }
 0x18f   : > { %v515_v61 = vadd.f32 %v1907_v3, %v514_v60  ;;  %822 = vmatmul.mubr.f32.gmra.mxu1 %v616_v59 }
 0x190   : > { %v516_v62 = vpop.f32.mrf.mxu0  ;;  %827 = vmatprep.mubr.f32.mxu1 %v1624_v0 }
 0x191   : > { %v617_v63 = vmax.f32 %v515_v61, 0.0 }
 0x192   : > { %v519_v1 = vpop.f32.mrf.mxu0 }
 0x193   : > { %v520_v2 = vadd.f32 %v1907_v3, %v519_v1  ;;  %828 = vmatmul.mubr.f32.gmra.mxu1 %v617_v63 }
 0x194   : > { %v521_v4 = vpop.f32.mrf.mxu0  ;;  %833 = vmatprep.mubr.f32.mxu1 %v1624_v0 }
 0x195   : > { %v618_v5 = vmax.f32 %v520_v2, 0.0 }
 0x196   : > { %v524_v6 = vpop.f32.mrf.mxu0 }
 0x197   : > { %v525_v7 = vadd.f32 %v1907_v3, %v524_v6  ;;  %834 = vmatmul.mubr.f32.gmra.mxu1 %v618_v5 }
 0x198   : > { %v526_v8 = vpop.f32.mrf.mxu0  ;;  %839 = vmatprep.mubr.f32.mxu1 %v1624_v0 }
 0x199   : > { %v619_v9 = vmax.f32 %v525_v7, 0.0  ;;  %v669_v8 = vlaneseq }
 0x19a   : > { %v529_v10 = vpop.f32.mrf.mxu0 }
 0x19b   : > { %v530_v11 = vadd.f32 %v1907_v3, %v529_v10  ;;  %840 = vmatmul.mubr.f32.gmra.mxu1 %v619_v9  ;;  %v670_v9 = vshrl.u32 %v669_v8, 7 }
 0x19c   : > { %v531_v12 = vpop.f32.mrf.mxu0  ;;  %845 = vmatprep.mubr.f32.mxu1 %v1624_v0 }
 0x19d   : > { %v620_v13 = vmax.f32 %v530_v11, 0.0  ;;  %v671_v10 = vsub.s32 0, %v670_v9  ;;  %v667_v11 = vld [vmem:[%s2165_s4] sm:$0x3]  ;;  %v675_v12 = vsub.s32 1, %v670_v9 }
 0x19e   : > { %v534_v14 = vpop.f32.mrf.mxu0 }
 0x19f   : > { %v535_v15 = vadd.f32 %v1907_v3, %v534_v14  ;;  %846 = vmatmul.mubr.f32.gmra.mxu1 %v620_v13  ;;  %v1975_v13 = vrot.slane %v667_v11, %v671_v10  ;;  %v1977_v14 = vrot.slane %v667_v11, %v675_v12 }
 0x1a0   : > { %v536_v16 = vpop.f32.mrf.mxu0  ;;  %851 = vmatprep.mubr.f32.mxu1 %v1624_v0 }
 0x1a1   : > { %v621_v17 = vmax.f32 %v535_v15, 0.0 }
 0x1a2   : > { %v539_v18 = vpop.f32.mrf.mxu0 }
 0x1a3   : > { %v540_v19 = vadd.f32 %v1907_v3, %v539_v18  ;;  %852 = vmatmul.mubr.f32.gmra.mxu1 %v621_v17 }
 0x1a4   : > { %v541_v20 = vpop.f32.mrf.mxu0  ;;  %857 = vmatprep.mubr.f32.mxu1 %v1624_v0 }
 0x1a5   : > { %v622_v21 = vmax.f32 %v540_v19, 0.0 }
 0x1a6   : > { %v544_v22 = vpop.f32.mrf.mxu0 }
 0x1a7   : > { %v545_v23 = vadd.f32 %v1907_v3, %v544_v22  ;;  %858 = vmatmul.mubr.f32.gmra.mxu1 %v622_v21 }
 0x1a8   : > { %v546_v24 = vpop.f32.mrf.mxu0  ;;  %863 = vmatprep.mubr.f32.mxu1 %v1624_v0 }
 0x1a9   : > { %v623_v25 = vmax.f32 %v545_v23, 0.0 }
 0x1aa   : > { %v549_v26 = vpop.f32.mrf.mxu0 }
 0x1ab   : > { %v550_v27 = vadd.f32 %v1907_v3, %v549_v26  ;;  %864 = vmatmul.mubr.f32.gmra.mxu1 %v623_v25 }
 0x1ac   : > { %v551_v28 = vpop.f32.mrf.mxu0  ;;  %869 = vmatprep.mubr.f32.mxu1 %v1624_v0 }
 0x1ad   : > { %v624_v29 = vmax.f32 %v550_v27, 0.0 }
 0x1ae   : > { %v554_v30 = vpop.f32.mrf.mxu0 }
 0x1af   : > { %v555_v31 = vadd.f32 %v1907_v3, %v554_v30  ;;  %870 = vmatmul.mubr.f32.gmra.mxu1 %v624_v29 }
 0x1b0   : > { %v556_v32 = vpop.f32.mrf.mxu0  ;;  %875 = vmatprep.mubr.f32.mxu1 %v1624_v0 }
 0x1b1   : > { %v625_v33 = vmax.f32 %v555_v31, 0.0 }
 0x1b2   : > { %v559_v34 = vpop.f32.mrf.mxu0 }
 0x1b3   : > { %v560_v35 = vadd.f32 %v1907_v3, %v559_v34  ;;  %876 = vmatmul.mubr.f32.gmra.mxu1 %v625_v33 }
 0x1b4   : > { %v561_v36 = vpop.f32.mrf.mxu0  ;;  %881 = vmatprep.mubr.f32.mxu1 %v1624_v0 }
 0x1b5   : > { %v626_v37 = vmax.f32 %v560_v35, 0.0 }
 0x1b6   : > { %v564_v38 = vpop.f32.mrf.mxu0 }
 0x1b7   : > { %v565_v39 = vadd.f32 %v1907_v3, %v564_v38  ;;  %882 = vmatmul.mubr.f32.gmra.mxu1 %v626_v37 }
 0x1b8   : > { %v566_v40 = vpop.f32.mrf.mxu0  ;;  %887 = vmatprep.mubr.f32.mxu1 %v1624_v0 }
 0x1b9   : > { %v627_v41 = vmax.f32 %v565_v39, 0.0 }
 0x1ba   : > { %v569_v42 = vpop.f32.mrf.mxu0 }
 0x1bb   : > { %v570_v43 = vadd.f32 %v1907_v3, %v569_v42  ;;  %888 = vmatmul.mubr.f32.gmra.mxu1 %v627_v41 }
 0x1bc   : > { %v571_v44 = vpop.f32.mrf.mxu0  ;;  %893 = vmatprep.mubr.f32.mxu1 %v1624_v0 }
 0x1bd   : > { %v628_v45 = vmax.f32 %v570_v43, 0.0 }
 0x1be   : > { %v574_v46 = vpop.f32.mrf.mxu0 }
 0x1bf   : > { %v575_v47 = vadd.f32 %v1907_v3, %v574_v46  ;;  %894 = vmatmul.mubr.f32.gmra.mxu1 %v628_v45 }
 0x1c0   : > { %v576_v48 = vpop.f32.mrf.mxu0  ;;  %899 = vmatprep.mubr.f32.mxu1 %v1624_v0 }
 0x1c1   : > { %v629_v49 = vmax.f32 %v575_v47, 0.0 }
 0x1c2   : > { %v579_v50 = vpop.f32.mrf.mxu0 }
 0x1c3   : > { %v580_v51 = vadd.f32 %v1907_v3, %v579_v50  ;;  %900 = vmatmul.mubr.f32.gmra.mxu1 %v629_v49 }
 0x1c4   : > { %v581_v52 = vpop.f32.mrf.mxu0  ;;  %905 = vmatprep.mubr.f32.mxu1 %v1624_v0 }
 0x1c5   : > { %v630_v53 = vmax.f32 %v580_v51, 0.0 }
 0x1c6   : > { %v584_v54 = vpop.f32.mrf.mxu0 }
 0x1c7   : > { %v585_v55 = vadd.f32 %v1907_v3, %v584_v54  ;;  %906 = vmatmul.mubr.f32.gmra.mxu1 %v630_v53 }
 0x1c8   : > { %v586_v56 = vpop.f32.mrf.mxu0  ;;  %911 = vmatprep.mubr.f32.mxu1 %v1624_v0 }
 0x1c9   : > { %v631_v57 = vmax.f32 %v585_v55, 0.0 }
 0x1ca   : > { %v589_v58 = vpop.f32.mrf.mxu0 }
 0x1cb   : > { %v590_v59 = vadd.f32 %v1907_v3, %v589_v58  ;;  %912 = vmatmul.mubr.f32.gmra.mxu1 %v631_v57 }
 0x1cc   : > { %v591_v60 = vpop.f32.mrf.mxu0  ;;  %917 = vmatprep.mubr.f32.mxu1 %v1624_v0 }
 0x1cd   : > { %v632_v61 = vmax.f32 %v590_v59, 0.0 }
 0x1ce   : > { %v594_v62 = vpop.f32.mrf.mxu0 }
 0x1cf   : > { %v595_v63 = vadd.f32 %v1907_v3, %v594_v62  ;;  %918 = vmatmul.mubr.f32.gmra.mxu1 %v632_v61 }
 0x1d0   : > { %v596_v1 = vpop.f32.mrf.mxu0  ;;  %923 = vmatprep.mubr.f32.mxu1 %v1624_v0 }
 0x1d1   : > { %v633_v2 = vmax.f32 %v595_v63, 0.0 }
 0x1d2   : > { %v599_v4 = vpop.f32.mrf.mxu0 }
 0x1d3   : > { %v600_v5 = vadd.f32 %v1907_v3, %v599_v4  ;;  %924 = vmatmul.mubr.f32.gmra.mxu1 %v633_v2 }
 0x1d4   : > { %v601_v6 = vpop.f32.mrf.mxu0  ;;  %929 = vmatprep.mubr.f32.mxu1 %v1624_v0 }
 0x1d5   : > { %v634_v7 = vmax.f32 %v600_v5, 0.0 }
 0x1d7   : > { %930 = vmatmul.mubr.f32.gmra.mxu1 %v634_v7 }
 0x21b   : > { %v745_v3 = vpop.f32.mrf.mxu1 }
 0x21c   : > { %v746_v15 = vadd.f32 %v745_v3, %v1975_v13 }
 0x21d   : > { %v747_v16 = vpop.f32.mrf.mxu1 }
 0x21e   : > { %1133 = vst [vmem:[%s1982_s12] sm:$0xff] %v746_v15  ;;  %v748_v0 = vadd.f32 %v747_v16, %v1977_v14 }
 0x21f   : > { %v751_v17 = vpop.f32.mrf.mxu1 }
 0x220   : > { %v943_v18 = vmul.f32 1.442695, %v748_v0  ;;  %v752_v19 = vadd.f32 %v751_v17, %v1975_v13 }
 0x221   : > { %v753_v20 = vpop.f32.mrf.mxu1 }
 0x222   : > { %1403 = vpow2.f32 %v943_v18  ;;  %1135 = vst [vmem:[%s1982_s12 + $0x10] sm:$0xff] %v752_v19  ;;  %v754_v21 = vadd.f32 %v753_v20, %v1977_v14 }
 0x223   : > { %v757_v22 = vpop.f32.mrf.mxu1 }
 0x224   : > { %v947_v23 = vmul.f32 1.442695, %v754_v21  ;;  %v758_v24 = vadd.f32 %v757_v22, %v1975_v13 }
 0x225   : > { %v759_v25 = vpop.f32.mrf.mxu1 }
 0x226   : > { %1405 = vpow2.f32 %v947_v23  ;;  %1137 = vst [vmem:[%s1982_s12 + $0x20] sm:$0xff] %v758_v24  ;;  %v760_v26 = vadd.f32 %v759_v25, %v1977_v14 }
 0x227   : > { %v763_v27 = vpop.f32.mrf.mxu1 }
 0x228   : > { %v951_v28 = vmul.f32 1.442695, %v760_v26  ;;  %v764_v29 = vadd.f32 %v763_v27, %v1975_v13 }
 0x229   : > { %v765_v30 = vpop.f32.mrf.mxu1 }
 0x22a   : > { %1407 = vpow2.f32 %v951_v28  ;;  %1139 = vst [vmem:[%s1982_s12 + $0x30] sm:$0xff] %v764_v29  ;;  %v766_v31 = vadd.f32 %v765_v30, %v1977_v14 }
 0x22b   : > { %v769_v32 = vpop.f32.mrf.mxu1 }
 0x22c   : > { %v955_v33 = vmul.f32 1.442695, %v766_v31  ;;  %v770_v34 = vadd.f32 %v769_v32, %v1975_v13 }
 0x22d   : > { %v771_v35 = vpop.f32.mrf.mxu1 }
 0x22e   : > { %1409 = vpow2.f32 %v955_v33  ;;  %1141 = vst [vmem:[%s1982_s12 + $0x40] sm:$0xff] %v770_v34  ;;  %v772_v36 = vadd.f32 %v771_v35, %v1977_v14 }
 0x22f   : > { %v1404_v37 = vpop.eup %1403  ;;  %v775_v38 = vpop.f32.mrf.mxu1 }
 0x230   : > { %1134 = vst [vmem:[%s1982_s12 + $0x8] sm:$0xff] %v1404_v37  ;;  %v959_v39 = vmul.f32 1.442695, %v772_v36  ;;  %v776_v40 = vadd.f32 %v775_v38, %v1975_v13 }
 0x231   : > { %v777_v41 = vpop.f32.mrf.mxu1 }
 0x232   : > { %1411 = vpow2.f32 %v959_v39  ;;  %1143 = vst [vmem:[%s1982_s12 + $0x50] sm:$0xff] %v776_v40  ;;  %v778_v42 = vadd.f32 %v777_v41, %v1977_v14 }
 0x233   : > { %v1406_v43 = vpop.eup %1405  ;;  %v781_v44 = vpop.f32.mrf.mxu1 }
 0x234   : > { %1136 = vst [vmem:[%s1982_s12 + $0x18] sm:$0xff] %v1406_v43  ;;  %v963_v45 = vmul.f32 1.442695, %v778_v42  ;;  %v782_v46 = vadd.f32 %v781_v44, %v1975_v13 }
 0x235   : > { %v783_v47 = vpop.f32.mrf.mxu1 }
 0x236   : > { %1413 = vpow2.f32 %v963_v45  ;;  %1145 = vst [vmem:[%s1982_s12 + $0x60] sm:$0xff] %v782_v46  ;;  %v784_v48 = vadd.f32 %v783_v47, %v1977_v14 }
 0x237   : > { %v1408_v49 = vpop.eup %1407  ;;  %v787_v50 = vpop.f32.mrf.mxu1 }
 0x238   : > { %1138 = vst [vmem:[%s1982_s12 + $0x28] sm:$0xff] %v1408_v49  ;;  %v967_v51 = vmul.f32 1.442695, %v784_v48  ;;  %v788_v52 = vadd.f32 %v787_v50, %v1975_v13 }
 0x239   : > { %v789_v53 = vpop.f32.mrf.mxu1 }
 0x23a   : > { %1415 = vpow2.f32 %v967_v51  ;;  %1147 = vst [vmem:[%s1982_s12 + $0x70] sm:$0xff] %v788_v52  ;;  %v790_v54 = vadd.f32 %v789_v53, %v1977_v14 }
 0x23b   : > { %v1410_v55 = vpop.eup %1409  ;;  %v793_v56 = vpop.f32.mrf.mxu1 }
 0x23c   : > { %1140 = vst [vmem:[%s1982_s12 + $0x38] sm:$0xff] %v1410_v55  ;;  %v971_v57 = vmul.f32 1.442695, %v790_v54  ;;  %v794_v58 = vadd.f32 %v793_v56, %v1975_v13 }
 0x23d   : > { %v795_v59 = vpop.f32.mrf.mxu1 }
 0x23e   : > { %1417 = vpow2.f32 %v971_v57  ;;  %1149 = vst [vmem:[%s1982_s12 + $0x80] sm:$0xff] %v794_v58  ;;  %v796_v60 = vadd.f32 %v795_v59, %v1977_v14 }
 0x23f   : > { %v1412_v61 = vpop.eup %1411  ;;  %v799_v62 = vpop.f32.mrf.mxu1 }
 0x240   : > { %1142 = vst [vmem:[%s1982_s12 + $0x48] sm:$0xff] %v1412_v61  ;;  %v975_v63 = vmul.f32 1.442695, %v796_v60  ;;  %v800_v1 = vadd.f32 %v799_v62, %v1975_v13 }
 0x241   : > { %v801_v2 = vpop.f32.mrf.mxu1 }
 0x242   : > { %1419 = vpow2.f32 %v975_v63  ;;  %1151 = vst [vmem:[%s1982_s12 + $0x90] sm:$0xff] %v800_v1  ;;  %v802_v4 = vadd.f32 %v801_v2, %v1977_v14 }
 0x243   : > { %v1414_v5 = vpop.eup %1413  ;;  %v805_v6 = vpop.f32.mrf.mxu1 }
 0x244   : > { %1144 = vst [vmem:[%s1982_s12 + $0x58] sm:$0xff] %v1414_v5  ;;  %v979_v7 = vmul.f32 1.442695, %v802_v4  ;;  %v806_v8 = vadd.f32 %v805_v6, %v1975_v13 }
 0x245   : > { %v807_v9 = vpop.f32.mrf.mxu1 }
 0x246   : > { %1421 = vpow2.f32 %v979_v7  ;;  %1153 = vst [vmem:[%s1982_s12 + $0xa0] sm:$0xff] %v806_v8  ;;  %v808_v10 = vadd.f32 %v807_v9, %v1977_v14 }
 0x247   : > { %v1416_v11 = vpop.eup %1415  ;;  %v811_v12 = vpop.f32.mrf.mxu1 }
 0x248   : > { %1146 = vst [vmem:[%s1982_s12 + $0x68] sm:$0xff] %v1416_v11  ;;  %v983_v3 = vmul.f32 1.442695, %v808_v10  ;;  %v812_v15 = vadd.f32 %v811_v12, %v1975_v13 }
 0x249   : > { %v813_v16 = vpop.f32.mrf.mxu1 }
 0x24a   : > { %1423 = vpow2.f32 %v983_v3  ;;  %1155 = vst [vmem:[%s1982_s12 + $0xb0] sm:$0xff] %v812_v15  ;;  %v814_v0 = vadd.f32 %v813_v16, %v1977_v14 }
 0x24b   : > { %v1418_v17 = vpop.eup %1417  ;;  %v817_v18 = vpop.f32.mrf.mxu1 }
 0x24c   : > { %1148 = vst [vmem:[%s1982_s12 + $0x78] sm:$0xff] %v1418_v17  ;;  %v987_v19 = vmul.f32 1.442695, %v814_v0  ;;  %v818_v20 = vadd.f32 %v817_v18, %v1975_v13 }
 0x24d   : > { %v819_v21 = vpop.f32.mrf.mxu1 }
 0x24e   : > { %1425 = vpow2.f32 %v987_v19  ;;  %1157 = vst [vmem:[%s1982_s12 + $0xc0] sm:$0xff] %v818_v20  ;;  %v820_v22 = vadd.f32 %v819_v21, %v1977_v14 }
 0x24f   : > { %v1420_v23 = vpop.eup %1419  ;;  %v823_v24 = vpop.f32.mrf.mxu1 }
 0x250   : > { %1150 = vst [vmem:[%s1982_s12 + $0x88] sm:$0xff] %v1420_v23  ;;  %v991_v25 = vmul.f32 1.442695, %v820_v22  ;;  %v824_v26 = vadd.f32 %v823_v24, %v1975_v13 }
 0x251   : > { %v825_v27 = vpop.f32.mrf.mxu1 }
 0x252   : > { %1427 = vpow2.f32 %v991_v25  ;;  %1159 = vst [vmem:[%s1982_s12 + $0xd0] sm:$0xff] %v824_v26  ;;  %v826_v28 = vadd.f32 %v825_v27, %v1977_v14 }
 0x253   : > { %v1422_v29 = vpop.eup %1421  ;;  %v829_v30 = vpop.f32.mrf.mxu1 }
 0x254   : > { %1152 = vst [vmem:[%s1982_s12 + $0x98] sm:$0xff] %v1422_v29  ;;  %v995_v31 = vmul.f32 1.442695, %v826_v28  ;;  %v830_v32 = vadd.f32 %v829_v30, %v1975_v13 }
 0x255   : > { %v831_v33 = vpop.f32.mrf.mxu1 }
 0x256   : > { %1429 = vpow2.f32 %v995_v31  ;;  %1161 = vst [vmem:[%s1982_s12 + $0xe0] sm:$0xff] %v830_v32  ;;  %v832_v34 = vadd.f32 %v831_v33, %v1977_v14 }
 0x257   : > { %v1424_v35 = vpop.eup %1423  ;;  %v835_v36 = vpop.f32.mrf.mxu1 }
 0x258   : > { %1154 = vst [vmem:[%s1982_s12 + $0xa8] sm:$0xff] %v1424_v35  ;;  %v999_v37 = vmul.f32 1.442695, %v832_v34  ;;  %v836_v38 = vadd.f32 %v835_v36, %v1975_v13 }
 0x259   : > { %v837_v39 = vpop.f32.mrf.mxu1 }
 0x25a   : > { %1431 = vpow2.f32 %v999_v37  ;;  %1163 = vst [vmem:[%s1982_s12 + $0xf0] sm:$0xff] %v836_v38  ;;  %v838_v40 = vadd.f32 %v837_v39, %v1977_v14 }
 0x25b   : > { %v1426_v41 = vpop.eup %1425  ;;  %v841_v42 = vpop.f32.mrf.mxu1 }
 0x25c   : > { %1156 = vst [vmem:[%s1982_s12 + $0xb8] sm:$0xff] %v1426_v41  ;;  %v1003_v43 = vmul.f32 1.442695, %v838_v40  ;;  %v842_v44 = vadd.f32 %v841_v42, %v1975_v13 }
 0x25d   : > { %v843_v45 = vpop.f32.mrf.mxu1 }
 0x25e   : > { %1433 = vpow2.f32 %v1003_v43  ;;  %1165 = vst [vmem:[%s1982_s12 + $0x100] sm:$0xff] %v842_v44  ;;  %v844_v46 = vadd.f32 %v843_v45, %v1977_v14 }
 0x25f   : > { %v1428_v47 = vpop.eup %1427  ;;  %v847_v48 = vpop.f32.mrf.mxu1 }
 0x260   : > { %1158 = vst [vmem:[%s1982_s12 + $0xc8] sm:$0xff] %v1428_v47  ;;  %v1007_v49 = vmul.f32 1.442695, %v844_v46  ;;  %v848_v50 = vadd.f32 %v847_v48, %v1975_v13 }
 0x261   : > { %v849_v51 = vpop.f32.mrf.mxu1 }
 0x262   : > { %1435 = vpow2.f32 %v1007_v49  ;;  %1167 = vst [vmem:[%s1982_s12 + $0x110] sm:$0xff] %v848_v50  ;;  %v850_v52 = vadd.f32 %v849_v51, %v1977_v14 }
 0x263   : > { %v1430_v53 = vpop.eup %1429  ;;  %v853_v54 = vpop.f32.mrf.mxu1 }
 0x264   : > { %1160 = vst [vmem:[%s1982_s12 + $0xd8] sm:$0xff] %v1430_v53  ;;  %v1011_v55 = vmul.f32 1.442695, %v850_v52  ;;  %v854_v56 = vadd.f32 %v853_v54, %v1975_v13 }
 0x265   : > { %v855_v57 = vpop.f32.mrf.mxu1 }
 0x266   : > { %1437 = vpow2.f32 %v1011_v55  ;;  %1169 = vst [vmem:[%s1982_s12 + $0x120] sm:$0xff] %v854_v56  ;;  %v856_v58 = vadd.f32 %v855_v57, %v1977_v14 }
 0x267   : > { %v1432_v59 = vpop.eup %1431  ;;  %v859_v60 = vpop.f32.mrf.mxu1 }
 0x268   : > { %1162 = vst [vmem:[%s1982_s12 + $0xe8] sm:$0xff] %v1432_v59  ;;  %v1015_v61 = vmul.f32 1.442695, %v856_v58  ;;  %v860_v62 = vadd.f32 %v859_v60, %v1975_v13 }
 0x269   : > { %v861_v63 = vpop.f32.mrf.mxu1 }
 0x26a   : > { %1439 = vpow2.f32 %v1015_v61  ;;  %1171 = vst [vmem:[%s1982_s12 + $0x130] sm:$0xff] %v860_v62  ;;  %v862_v1 = vadd.f32 %v861_v63, %v1977_v14 }
 0x26b   : > { %v1434_v2 = vpop.eup %1433  ;;  %v865_v4 = vpop.f32.mrf.mxu1 }
 0x26c   : > { %1164 = vst [vmem:[%s1982_s12 + $0xf8] sm:$0xff] %v1434_v2  ;;  %v1019_v5 = vmul.f32 1.442695, %v862_v1  ;;  %v866_v6 = vadd.f32 %v865_v4, %v1975_v13 }
 0x26d   : > { %v867_v7 = vpop.f32.mrf.mxu1 }
 0x26e   : > { %1441 = vpow2.f32 %v1019_v5  ;;  %1173 = vst [vmem:[%s1982_s12 + $0x140] sm:$0xff] %v866_v6  ;;  %v868_v8 = vadd.f32 %v867_v7, %v1977_v14 }
 0x26f   : > { %v1436_v9 = vpop.eup %1435  ;;  %v871_v10 = vpop.f32.mrf.mxu1 }
 0x270   : > { %1166 = vst [vmem:[%s1982_s12 + $0x108] sm:$0xff] %v1436_v9  ;;  %v1023_v11 = vmul.f32 1.442695, %v868_v8  ;;  %v872_v12 = vadd.f32 %v871_v10, %v1975_v13 }
 0x271   : > { %v873_v3 = vpop.f32.mrf.mxu1 }
 0x272   : > { %1443 = vpow2.f32 %v1023_v11  ;;  %1175 = vst [vmem:[%s1982_s12 + $0x150] sm:$0xff] %v872_v12  ;;  %v874_v15 = vadd.f32 %v873_v3, %v1977_v14 }
 0x273   : > { %v1438_v16 = vpop.eup %1437  ;;  %v877_v0 = vpop.f32.mrf.mxu1 }
 0x274   : > { %1168 = vst [vmem:[%s1982_s12 + $0x118] sm:$0xff] %v1438_v16  ;;  %v1027_v17 = vmul.f32 1.442695, %v874_v15  ;;  %v878_v18 = vadd.f32 %v877_v0, %v1975_v13 }
 0x275   : > { %v879_v19 = vpop.f32.mrf.mxu1 }
 0x276   : > { %1445 = vpow2.f32 %v1027_v17  ;;  %1177 = vst [vmem:[%s1982_s12 + $0x160] sm:$0xff] %v878_v18  ;;  %v880_v20 = vadd.f32 %v879_v19, %v1977_v14 }
 0x277   : > { %v1440_v21 = vpop.eup %1439  ;;  %v883_v22 = vpop.f32.mrf.mxu1 }
 0x278   : > { %1170 = vst [vmem:[%s1982_s12 + $0x128] sm:$0xff] %v1440_v21  ;;  %v1031_v23 = vmul.f32 1.442695, %v880_v20  ;;  %v884_v24 = vadd.f32 %v883_v22, %v1975_v13 }
 0x279   : > { %v885_v25 = vpop.f32.mrf.mxu1 }
 0x27a   : > { %1447 = vpow2.f32 %v1031_v23  ;;  %1179 = vst [vmem:[%s1982_s12 + $0x170] sm:$0xff] %v884_v24  ;;  %v886_v26 = vadd.f32 %v885_v25, %v1977_v14 }
 0x27b   : > { %v1442_v27 = vpop.eup %1441  ;;  %v889_v28 = vpop.f32.mrf.mxu1 }
 0x27c   : > { %1172 = vst [vmem:[%s1982_s12 + $0x138] sm:$0xff] %v1442_v27  ;;  %v1035_v29 = vmul.f32 1.442695, %v886_v26  ;;  %v890_v30 = vadd.f32 %v889_v28, %v1975_v13 }
 0x27d   : > { %v891_v31 = vpop.f32.mrf.mxu1 }
 0x27e   : > { %1449 = vpow2.f32 %v1035_v29  ;;  %1181 = vst [vmem:[%s1982_s12 + $0x180] sm:$0xff] %v890_v30  ;;  %v892_v32 = vadd.f32 %v891_v31, %v1977_v14 }
 0x27f   : > { %v1444_v33 = vpop.eup %1443  ;;  %v895_v34 = vpop.f32.mrf.mxu1 }
 0x280   : > { %1174 = vst [vmem:[%s1982_s12 + $0x148] sm:$0xff] %v1444_v33  ;;  %v1039_v35 = vmul.f32 1.442695, %v892_v32  ;;  %v896_v36 = vadd.f32 %v895_v34, %v1975_v13 }
 0x281   : > { %v897_v37 = vpop.f32.mrf.mxu1 }
 0x282   : > { %1451 = vpow2.f32 %v1039_v35  ;;  %1183 = vst [vmem:[%s1982_s12 + $0x190] sm:$0xff] %v896_v36  ;;  %v898_v38 = vadd.f32 %v897_v37, %v1977_v14 }
 0x283   : > { %v1446_v39 = vpop.eup %1445  ;;  %v901_v40 = vpop.f32.mrf.mxu1 }
 0x284   : > { %1176 = vst [vmem:[%s1982_s12 + $0x158] sm:$0xff] %v1446_v39  ;;  %v1043_v41 = vmul.f32 1.442695, %v898_v38  ;;  %v902_v42 = vadd.f32 %v901_v40, %v1975_v13 }
 0x285   : > { %v903_v43 = vpop.f32.mrf.mxu1 }
 0x286   : > { %1453 = vpow2.f32 %v1043_v41  ;;  %1185 = vst [vmem:[%s1982_s12 + $0x1a0] sm:$0xff] %v902_v42  ;;  %v904_v44 = vadd.f32 %v903_v43, %v1977_v14 }
 0x287   : > { %v1448_v45 = vpop.eup %1447  ;;  %v907_v46 = vpop.f32.mrf.mxu1 }
 0x288   : > { %1178 = vst [vmem:[%s1982_s12 + $0x168] sm:$0xff] %v1448_v45  ;;  %v1047_v47 = vmul.f32 1.442695, %v904_v44  ;;  %v908_v48 = vadd.f32 %v907_v46, %v1975_v13 }
 0x289   : > { %v909_v49 = vpop.f32.mrf.mxu1 }
 0x28a   : > { %1455 = vpow2.f32 %v1047_v47  ;;  %1187 = vst [vmem:[%s1982_s12 + $0x1b0] sm:$0xff] %v908_v48  ;;  %v910_v50 = vadd.f32 %v909_v49, %v1977_v14 }
 0x28b   : > { %v1450_v51 = vpop.eup %1449  ;;  %v913_v52 = vpop.f32.mrf.mxu1 }
 0x28c   : > { %1180 = vst [vmem:[%s1982_s12 + $0x178] sm:$0xff] %v1450_v51  ;;  %v1051_v53 = vmul.f32 1.442695, %v910_v50  ;;  %v914_v54 = vadd.f32 %v913_v52, %v1975_v13 }
 0x28d   : > { %v915_v55 = vpop.f32.mrf.mxu1 }
 0x28e   : > { %1457 = vpow2.f32 %v1051_v53  ;;  %1189 = vst [vmem:[%s1982_s12 + $0x1c0] sm:$0xff] %v914_v54  ;;  %v916_v56 = vadd.f32 %v915_v55, %v1977_v14 }
 0x28f   : > { %v1452_v57 = vpop.eup %1451  ;;  %v919_v58 = vpop.f32.mrf.mxu1 }
 0x290   : > { %1182 = vst [vmem:[%s1982_s12 + $0x188] sm:$0xff] %v1452_v57  ;;  %v1055_v59 = vmul.f32 1.442695, %v916_v56  ;;  %v920_v60 = vadd.f32 %v919_v58, %v1975_v13 }
 0x291   : > { %v921_v61 = vpop.f32.mrf.mxu1 }
 0x292   : > { %1459 = vpow2.f32 %v1055_v59  ;;  %1191 = vst [vmem:[%s1982_s12 + $0x1d0] sm:$0xff] %v920_v60  ;;  %v922_v62 = vadd.f32 %v921_v61, %v1977_v14 }
 0x293   : > { %v1454_v63 = vpop.eup %1453  ;;  %v925_v1 = vpop.f32.mrf.mxu1 }
 0x294   : > { %1184 = vst [vmem:[%s1982_s12 + $0x198] sm:$0xff] %v1454_v63  ;;  %v1059_v2 = vmul.f32 1.442695, %v922_v62  ;;  %v926_v4 = vadd.f32 %v925_v1, %v1975_v13 }
 0x295   : > { %v927_v5 = vpop.f32.mrf.mxu1 }
 0x296   : > { %1461 = vpow2.f32 %v1059_v2  ;;  %1193 = vst [vmem:[%s1982_s12 + $0x1e0] sm:$0xff] %v926_v4  ;;  %v928_v6 = vadd.f32 %v927_v5, %v1977_v14 }
 0x297   : > { %v1456_v7 = vpop.eup %1455  ;;  %v931_v8 = vpop.f32.mrf.mxu1 }
 0x298   : > { %1186 = vst [vmem:[%s1982_s12 + $0x1a8] sm:$0xff] %v1456_v7  ;;  %v1063_v9 = vmul.f32 1.442695, %v928_v6  ;;  %v932_v10 = vadd.f32 %v931_v8, %v1975_v13 }
 0x299   : > { %v933_v11 = vpop.f32.mrf.mxu1 }
 0x29a   : > { %1463 = vpow2.f32 %v1063_v9  ;;  %1195 = vst [vmem:[%s1982_s12 + $0x1f0] sm:$0xff] %v932_v10  ;;  %v934_v12 = vadd.f32 %v933_v11, %v1977_v14 }
 0x29b   : > { %v1458_v3 = vpop.eup %1457 }
 0x29c   : > { %1188 = vst [vmem:[%s1982_s12 + $0x1b8] sm:$0xff] %v1458_v3  ;;  %v1067_v15 = vmul.f32 1.442695, %v934_v12 }
 0x29e   : > { %1465 = vpow2.f32 %v1067_v15 }
 0x29f   : > { %v1460_v16 = vpop.eup %1459 }
 0x2a0   : > { %1190 = vst [vmem:[%s1982_s12 + $0x1c8] sm:$0xff] %v1460_v16 }
 0x2a3   : > { %v1462_v0 = vpop.eup %1461 }
 0x2a4   : > { %1192 = vst [vmem:[%s1982_s12 + $0x1d8] sm:$0xff] %v1462_v0 }
 0x2a7   : > { %v1464_v13 = vpop.eup %1463 }
 0x2a8   : > { %1194 = vst [vmem:[%s1982_s12 + $0x1e8] sm:$0xff] %v1464_v13 }
 0x2ab   : > { %v1466_v14 = vpop.eup %1465 }
 0x2ac   : > { %1196 = vst [vmem:[%s1982_s12 + $0x1f8] sm:$0xff] %v1466_v14 }
 0x2ad   : > { %1560 = shalt.err (!%p1557_p9)
}
 0x2ae   : > { %s1561_s15 = scalar_lea.hbm %s2115_s11, 8192  ;;  %s1565_s14 = scalar_lea.hbm %s2166_s5, 16384 }
 0x2af   : > { %p1562_p13 = scmp.ne.s32.totalorder %s2115_s11, %s1561_s15  ;;  %p1566_p4 = scmp.lt.s32.totalorder %s2115_s11, %s2166_s5 }
 0x2b0   : > { %p1567_p8 = scmp.lt.s32.totalorder %s1565_s14, %s1561_s15 }
 0x2b1   : > { %p1563_p5 = pnand %p1562_p13, %p2184_p10 }
 0x2b2   : > { %p1568_p7 = por %p1567_p8, %p1566_p4 }
 0x2b3   : > { %p1564_p0 = pneg %p1563_p5 }
 0x2b5   : > { %p1569_p11 = pnand %p1568_p7, %p1564_p0 }
 0x2b7   : > { %1572 = shalt.err (!%p1569_p11)
}
 0x2b8   : > { %s1626_s16 = smov 256   ;;  %s1627_s9 = smov 16  }
 0x2b9   : > { %1339 = dma.vmem_to_hbm [thread:$0]  (%p2184_p10), %s2117_s8, 8192, %s2115_s11, %s1198_s27, %s1626_s16, %s1626_s16, %s1627_s9  }
 0x2ba PF: > { %s1227_s30 = sand.u32 1, %s1603_s18   ;;  %p2185_p1 = scmp.ne.s32.totalorder %s2173_s25, 0 }
 0x2bb   : > { %p2186_p2 = scmp.ge.s32.totalorder %s1615_s21, 2  ;;  %s1228_s23 = scalar_lea.sflag [#allocation4], %s1227_s30 }
 0x2bd   : > { %p1353_p6 = pnand %p2186_p2, %p2185_p1 }
 0x2bf   : > { %p1354_p12 = pneg %p1353_p6 }
 0x2c1   : > { %1598 = dma.done.wait (%p1354_p12), %s1228_s23, 8192  }
 0x2c2   : > { %1600 = vsyncadd (%p1354_p12), %s1228_s23, 4294959104  ;;  %p19_p3 = scmp.ge.s32.totalorder %s1733_s17, 4   ;;  %s2187_s18 = smov %s1607_s19 }
 0x2c3   : > { %s2188_s19 = smov %s1611_s20  ;;  %s2189_s20 = smov %s1742_s28 }
 0x2c4   : > { %s2190_s21 = smov %s1733_s17  ;;  %21 = sbr.rel (!%p19_p3) target bundleno = 6 (0x6), region = 93 }
 0x2c9   :  { %1233 = vsyncpa [#allocation3], 1 }
 0x2ca   :  { %1235 = vsyncpa [#allocation3 + $0x1], 1 }
 0x2cb   :  { %1236 = vsyncpa [#allocation6], 1 }
 0x2cc   :  { %1237 = vsyncpa [#allocation4], 1 }
 0x2cd   :  { %1239 = vsyncpa [#allocation4 + $0x1], 1 }

</bundles_post_ra>
